<compile_context>
chip_gen: v7x
topology: tpu7x:2x2x1
jax: 0.10.0
libtpu: 0.0.40
codegen_flags: <defaults>
</compile_context>

<pallas_src>
import functools

import jax
import jax.numpy as jnp
from jax.experimental import pallas as pl
from jax.experimental.pallas import tpu as pltpu

# LOSS_CONFIG.SMOOTH is not given in the snippet; use the documented default.
SMOOTH = 1e-05


def _round_up(a, b):
    return (a + b - 1) // b * b


def _dice_stats_kernel(x_ref, lab_ref, inter_ref, xsum_ref, lcnt_ref, *,
                       num_classes, rows_total, tile_rows, tiles_per_split,
                       mask_tail, mask_pad):
    p = pl.program_id(2)

    @pl.when(p == 0)
    def _init():
        inter_ref[...] = jnp.zeros_like(inter_ref)
        xsum_ref[...] = jnp.zeros_like(xsum_ref)
        lcnt_ref[...] = jnp.zeros_like(lcnt_ref)

    lab = lab_ref[0, 0]                                   # (tile_rows, 128) int32

    if mask_tail:
        # Last pixel tile may extend past `rows_total`; its contents are
        # unspecified.  Force out-of-range labels to -1 so they never match a
        # class, and build a validity mask from the global row index.
        s = pl.program_id(0)
        row0 = (s * tiles_per_split + p) * tile_rows
        rid = jax.lax.broadcasted_iota(jnp.int32, lab.shape, 0) + row0
        lab = jnp.where(rid < rows_total, lab, -1)

    # Channel slices (tile_rows, 128); cast after load (bf16 inputs stay bf16
    # over HBM/DMA).
    xc = [x_ref[0, c].astype(jnp.float32) for c in range(num_classes)]

    # Per-pixel softmax over channels == F.softmax(x, dim=1), unrolled over C
    # as plain elementwise ops (max / sub / exp / add) — no sublane reductions.
    m = xc[0]
    for c in range(1, num_classes):
        m = jnp.maximum(m, xc[c])
    es = [jnp.exp(xc[c] - m) for c in range(num_classes)]
    denom = es[0]
    for c in range(1, num_classes):
        denom = denom + es[c]
    # approx=True would move this to the cheap EUP path but adds ~2^-12 rel
    # error; keep exact to hold the 1e-5 self-test tolerance.
    scale = pl.reciprocal(denom, approx=False)

    need_valid = mask_tail or mask_pad
    if need_valid:
        valid = lab >= 0
        if not mask_tail:
            # Lane-alignment pad pixels have exact-zero logits (no NaN/Inf
            # possible), so folding validity into the normalization is safe
            # and saves one select per channel-element.
            scale = scale * valid.astype(jnp.float32)

    for c in range(num_classes):
        probs_c = es[c] * scale
        hit = lab == c
        inter_p = jnp.sum(jnp.where(hit, probs_c, 0.0), axis=0, keepdims=True)
        if mask_tail:
            # where-select is NaN-safe against garbage in the out-of-range
            # tail rows (probs there may be NaN/Inf).
            xsum_p = jnp.sum(jnp.where(valid, probs_c, 0.0),
                             axis=0, keepdims=True)
        else:
            xsum_p = jnp.sum(probs_c, axis=0, keepdims=True)
        lcnt_p = jnp.sum(jnp.where(hit, 1.0, 0.0), axis=0, keepdims=True)
        # Resident per-(split, batch, class) lane-partial accumulators.
        inter_ref[0, 0, c] += inter_p
        xsum_ref[0, 0, c] += xsum_p
        lcnt_ref[0, 0, c] += lcnt_p


def _choose_tile_rows(rows, num_classes, x_itemsize, want_splits,
                      vmem_buf_budget=12 * 1024 * 1024, max_rows_cap=1024):
    """Pick a balanced row-tile size (rows of 128 pixels) within a VMEM budget.

    Budget model: double-buffered x block (C * 128 * itemsize per row, no
    sublane padding — channels are a leading dim) + double-buffered int32
    label block (128 * 4 per row, lane-dense so no 8x padding).
    """
    per_row = 2 * 128 * (num_classes * x_itemsize + 4)
    max_rows = min(max_rows_cap, max(8, vmem_buf_budget // per_row))
    sub = {4: 8, 2: 16, 1: 32}.get(x_itemsize, 8)       # sublane multiple
    max_rows = max(sub, max_rows // sub * sub)
    # Balance: choose the number of tiles first, then evenly sized tiles, so
    # the last tile is not mostly dead pixels.
    nt = max(pl.cdiv(rows, max_rows), 1)
    nt = _round_up(nt, want_splits)
    tile_rows = _round_up(pl.cdiv(rows, nt), sub)
    if tile_rows >= rows:
        tile_rows = rows                                 # full-dim block
    nt = pl.cdiv(rows, tile_rows)
    return tile_rows, nt


def dice_loss_pallas(x, label, smooth=SMOOTH):
    """x: (N, C, H, W) float (f32/bf16), label: (N, H, W) int -> scalar loss."""
    N, C, H, W = x.shape
    P = H * W
    P128 = _round_up(P, 128)

    x3 = jnp.reshape(x, (N, C, P))                       # keep native dtype
    lab3 = jnp.reshape(label, (N, 1, P)).astype(jnp.int32)
    if P128 != P:
        # Only when H*W is not lane-aligned (rare); pads at most 127 pixels.
        pad = P128 - P
        x3 = jnp.pad(x3, ((0, 0), (0, 0), (0, pad)))
        lab3 = jnp.pad(lab3, ((0, 0), (0, 0), (0, pad)), constant_values=-1)
    rows = P128 // 128
    x4 = jnp.reshape(x3, (N, C, rows, 128))              # pixels on sublanes+lanes
    lab4 = jnp.reshape(lab3, (N, 1, rows, 128))

    want_splits = 2 if N == 1 else 1                     # keep both v7x TCs busy
    tile_rows, nt = _choose_tile_rows(rows, C, x4.dtype.itemsize, want_splits)
    if want_splits > 1 and nt >= want_splits and nt % want_splits == 0:
        S = want_splits
    else:
        S = 1
    PT = nt // S

    mask_tail = nt * tile_rows > rows                    # ragged last tile
    mask_pad = P128 != P                                 # lane-alignment pad

    kernel = functools.partial(
        _dice_stats_kernel, num_classes=C, rows_total=rows,
        tile_rows=tile_rows, tiles_per_split=PT,
        mask_tail=mask_tail, mask_pad=mask_pad)

    stat_shape = jax.ShapeDtypeStruct((S, N, C, 1, 128), jnp.float32)
    stat_spec = pl.BlockSpec((1, 1, C, 1, 128), lambda s, n, p: (s, n, 0, 0, 0))

    inter, xsum, lcnt = pl.pallas_call(
        kernel,
        out_shape=(stat_shape, stat_shape, stat_shape),
        grid_spec=pltpu.PrefetchScalarGridSpec(
            num_scalar_prefetch=0,
            grid=(S, N, PT),
            in_specs=[
                pl.BlockSpec((1, C, tile_rows, 128),
                             lambda s, n, p: (n, 0, s * PT + p, 0)),
                pl.BlockSpec((1, 1, tile_rows, 128),
                             lambda s, n, p: (n, 0, s * PT + p, 0)),
            ],
            out_specs=[stat_spec, stat_spec, stat_spec],
        ),
        compiler_params=pltpu.CompilerParams(
            dimension_semantics=("parallel", "parallel", "arbitrary"),
            vmem_limit_bytes=32 * 1024 * 1024),
    )(x4, lab4)

    inter = jnp.sum(inter, axis=(0, 3, 4))               # (N, C)
    union = jnp.sum(xsum, axis=(0, 3, 4)) + jnp.sum(lcnt, axis=(0, 3, 4))
    dice = (2.0 * inter + smooth) / (union + smooth)
    return 1.0 - jnp.mean(dice)


def dice_loss_ref(x, label, smooth=SMOOTH):
    """Pure-JAX reference mirroring the PyTorch forward."""
    x = jax.nn.softmax(x.astype(jnp.float32), axis=1)           # (N, C, H, W)
    num_classes = x.shape[1]
    oh = jax.nn.one_hot(label, num_classes, dtype=jnp.float32)  # (N, H, W, C)
    oh = jnp.transpose(oh, (0, 3, 1, 2))                        # (N, C, H, W)
    intersection = jnp.sum(x * oh, axis=(2, 3))
    union = jnp.sum(x, axis=(2, 3)) + jnp.sum(oh, axis=(2, 3))
    dice = (2.0 * intersection + smooth) / (union + smooth)
    return 1.0 - jnp.mean(dice)


if __name__ == "__main__":
    key = jax.random.PRNGKey(0)

    # Case 1: lane-aligned spatial size (no padding, no tail masking).
    N, C, H, W = 2, 4, 16, 16
    kx, kl, key = jax.random.split(key, 3)
    x = jax.random.normal(kx, (N, C, H, W), dtype=jnp.float32)
    label = jax.random.randint(kl, (N, H, W), 0, C, dtype=jnp.int32)
    loss = jax.block_until_ready(dice_loss_pallas(x, label))
    ref = jax.block_until_ready(dice_loss_ref(x, label))
    assert jnp.isfinite(loss), "non-finite loss"
    assert jnp.allclose(loss, ref, atol=1e-5, rtol=1e-5), (loss, ref)

    # Case 2: odd spatial size exercises the lane-alignment pad + valid mask.
    N2, C2, H2, W2 = 2, 4, 15, 15
    kx2, kl2, key = jax.random.split(key, 3)
    x2 = jax.random.normal(kx2, (N2, C2, H2, W2), dtype=jnp.float32)
    label2 = jax.random.randint(kl2, (N2, H2, W2), 0, C2, dtype=jnp.int32)
    loss2 = jax.block_until_ready(dice_loss_pallas(x2, label2))
    ref2 = jax.block_until_ready(dice_loss_ref(x2, label2))
    assert jnp.isfinite(loss2), "non-finite loss (padded case)"
    assert jnp.allclose(loss2, ref2, atol=1e-5, rtol=1e-5), (loss2, ref2)

    # Case 3: N == 1 exercises the pixel-axis core split + ragged tail mask.
    N3, C3, H3, W3 = 1, 4, 48, 48
    kx3, kl3 = jax.random.split(key)
    x3 = jax.random.normal(kx3, (N3, C3, H3, W3), dtype=jnp.float32)
    label3 = jax.random.randint(kl3, (N3, H3, W3), 0, C3, dtype=jnp.int32)
    loss3 = jax.block_until_ready(dice_loss_pallas(x3, label3))
    ref3 = jax.block_until_ready(dice_loss_ref(x3, label3))
    assert jnp.isfinite(loss3), "non-finite loss (split case)"
    assert jnp.allclose(loss3, ref3, atol=1e-5, rtol=1e-5), (loss3, ref3)

    print("KERNEL_OK")
</pallas_src>

<mosaic_0001>
module attributes {stable_mosaic.version = 11 : i64} {
  func.func @_dice_stats_kernel(%arg0: i32, %arg1: i32, %arg2: i32, %arg3: memref<1x4x2x128xf32, #tpu.memory_space<vmem>>, %arg4: memref<1x1x2x128xi32, #tpu.memory_space<vmem>>, %arg5: memref<1x1x4x1x128xf32, #tpu.memory_space<vmem>>, %arg6: memref<1x1x4x1x128xf32, #tpu.memory_space<vmem>>, %arg7: memref<1x1x4x1x128xf32, #tpu.memory_space<vmem>>) attributes {dimension_semantics = [#tpu.dimension_semantics<parallel>, #tpu.dimension_semantics<parallel>, #tpu.dimension_semantics<arbitrary>], iteration_bounds = array<i64: 1, 2, 1>, scalar_prefetch = 0 : i64, scratch_operands = 0 : i64, tpu.core_type = #tpu.core_type<tc>, window_params = [{transform_indices = @transform_0, window_bounds = array<i64: 1, 4, 2, 128>}, {transform_indices = @transform_1, window_bounds = array<i64: 1, 1, 2, 128>}, {transform_indices = @transform_2, window_bounds = array<i64: 1, 1, 4, 1, 128>}, {transform_indices = @transform_3, window_bounds = array<i64: 1, 1, 4, 1, 128>}, {transform_indices = @transform_4, window_bounds = array<i64: 1, 1, 4, 1, 128>}]} {
    %c0_i32 = arith.constant 0 : i32
    %0 = arith.cmpi eq, %arg2, %c0_i32 : i32
    %1 = arith.extui %0 : i1 to i32
    %c0_i32_0 = arith.constant 0 : i32
    %2 = arith.cmpi ne, %1, %c0_i32_0 : i32
    scf.if %2 {
      %cst_161 = arith.constant 0.000000e+00 : f32
      %156 = vector.broadcast %cst_161 : f32 to vector<1x1x4x1x128xf32>
      %c0_162 = arith.constant 0 : index
      %c0_163 = arith.constant 0 : index
      %c0_164 = arith.constant 0 : index
      %c0_165 = arith.constant 0 : index
      %c0_166 = arith.constant 0 : index
      %157 = vector.load %arg5[%c0_162, %c0_163, %c0_164, %c0_165, %c0_166] : memref<1x1x4x1x128xf32, #tpu.memory_space<vmem>>, vector<1x1x4x1x128xf32>
      tpu.vector_store %arg5[%c0_162, %c0_163, %c0_164, %c0_165, %c0_166], %156 {strides = array<i32>} : memref<1x1x4x1x128xf32, #tpu.memory_space<vmem>>, vector<1x1x4x1x128xf32>,
      %cst_167 = arith.constant 0.000000e+00 : f32
      %158 = vector.broadcast %cst_167 : f32 to vector<1x1x4x1x128xf32>
      %c0_168 = arith.constant 0 : index
      %c0_169 = arith.constant 0 : index
      %c0_170 = arith.constant 0 : index
      %c0_171 = arith.constant 0 : index
      %c0_172 = arith.constant 0 : index
      %159 = vector.load %arg6[%c0_168, %c0_169, %c0_170, %c0_171, %c0_172] : memref<1x1x4x1x128xf32, #tpu.memory_space<vmem>>, vector<1x1x4x1x128xf32>
      tpu.vector_store %arg6[%c0_168, %c0_169, %c0_170, %c0_171, %c0_172], %158 {strides = array<i32>} : memref<1x1x4x1x128xf32, #tpu.memory_space<vmem>>, vector<1x1x4x1x128xf32>,
      %cst_173 = arith.constant 0.000000e+00 : f32
      %160 = vector.broadcast %cst_173 : f32 to vector<1x1x4x1x128xf32>
      %c0_174 = arith.constant 0 : index
      %c0_175 = arith.constant 0 : index
      %c0_176 = arith.constant 0 : index
      %c0_177 = arith.constant 0 : index
      %c0_178 = arith.constant 0 : index
      %161 = vector.load %arg7[%c0_174, %c0_175, %c0_176, %c0_177, %c0_178] : memref<1x1x4x1x128xf32, #tpu.memory_space<vmem>>, vector<1x1x4x1x128xf32>
      tpu.vector_store %arg7[%c0_174, %c0_175, %c0_176, %c0_177, %c0_178], %160 {strides = array<i32>} : memref<1x1x4x1x128xf32, #tpu.memory_space<vmem>>, vector<1x1x4x1x128xf32>,
    } else {
    }
    %c0 = arith.constant 0 : index
    %c0_1 = arith.constant 0 : index
    %c0_2 = arith.constant 0 : index
    %c0_3 = arith.constant 0 : index
    %3 = vector.load %arg4[%c0, %c0_1, %c0_2, %c0_3] : memref<1x1x2x128xi32, #tpu.memory_space<vmem>>, vector<1x1x2x128xi32>
    %4 = vector.shape_cast %3 : vector<1x1x2x128xi32> to vector<2x128xi32>
    %c0_4 = arith.constant 0 : index
    %c0_5 = arith.constant 0 : index
    %c0_6 = arith.constant 0 : index
    %c0_7 = arith.constant 0 : index
    %5 = vector.load %arg3[%c0_4, %c0_5, %c0_6, %c0_7] : memref<1x4x2x128xf32, #tpu.memory_space<vmem>>, vector<1x1x2x128xf32>
    %6 = vector.shape_cast %5 : vector<1x1x2x128xf32> to vector<2x128xf32>
    %c0_8 = arith.constant 0 : index
    %c1 = arith.constant 1 : index
    %c0_9 = arith.constant 0 : index
    %c0_10 = arith.constant 0 : index
    %7 = vector.load %arg3[%c0_8, %c1, %c0_9, %c0_10] : memref<1x4x2x128xf32, #tpu.memory_space<vmem>>, vector<1x1x2x128xf32>
    %8 = vector.shape_cast %7 : vector<1x1x2x128xf32> to vector<2x128xf32>
    %c0_11 = arith.constant 0 : index
    %c2 = arith.constant 2 : index
    %c0_12 = arith.constant 0 : index
    %c0_13 = arith.constant 0 : index
    %9 = vector.load %arg3[%c0_11, %c2, %c0_12, %c0_13] : memref<1x4x2x128xf32, #tpu.memory_space<vmem>>, vector<1x1x2x128xf32>
    %10 = vector.shape_cast %9 : vector<1x1x2x128xf32> to vector<2x128xf32>
    %c0_14 = arith.constant 0 : index
    %c3 = arith.constant 3 : index
    %c0_15 = arith.constant 0 : index
    %c0_16 = arith.constant 0 : index
    %11 = vector.load %arg3[%c0_14, %c3, %c0_15, %c0_16] : memref<1x4x2x128xf32, #tpu.memory_space<vmem>>, vector<1x1x2x128xf32>
    %12 = vector.shape_cast %11 : vector<1x1x2x128xf32> to vector<2x128xf32>
    %13 = arith.maximumf %6, %8 : vector<2x128xf32>
    %14 = arith.maximumf %13, %10 : vector<2x128xf32>
    %15 = arith.maximumf %14, %12 : vector<2x128xf32>
    %16 = arith.subf %6, %15 : vector<2x128xf32>
    %17 = math.exp %16 : vector<2x128xf32>
    %18 = arith.subf %8, %15 : vector<2x128xf32>
    %19 = math.exp %18 : vector<2x128xf32>
    %20 = arith.subf %10, %15 : vector<2x128xf32>
    %21 = math.exp %20 : vector<2x128xf32>
    %22 = arith.subf %12, %15 : vector<2x128xf32>
    %23 = math.exp %22 : vector<2x128xf32>
    %24 = arith.addf %17, %19 : vector<2x128xf32>
    %25 = arith.addf %24, %21 : vector<2x128xf32>
    %26 = arith.addf %25, %23 : vector<2x128xf32>
    %27 = tpu.reciprocal %26 : vector<2x128xf32> -> vector<2x128xf32>
    %28 = arith.mulf %17, %27 : vector<2x128xf32>
    %c0_i32_17 = arith.constant 0 : i32
    %29 = vector.broadcast %c0_i32_17 : i32 to vector<2x128xi32>
    %30 = arith.cmpi eq, %4, %29 : vector<2x128xi32>
    %cst = arith.constant 0.000000e+00 : f32
    %31 = vector.broadcast %cst : f32 to vector<2x128xf32>
    %32 = arith.select %30, %28, %31 : vector<2x128xi1>, vector<2x128xf32>
    %cst_18 = arith.constant dense<0.000000e+00> : vector<128xf32>
    %33 = vector.multi_reduction <add>, %32, %cst_18 [0] : vector<2x128xf32> to vector<128xf32>
    %34 = vector.shape_cast %33 : vector<128xf32> to vector<1x128xf32>
    %cst_19 = arith.constant dense<0.000000e+00> : vector<128xf32>
    %35 = vector.multi_reduction <add>, %28, %cst_19 [0] : vector<2x128xf32> to vector<128xf32>
    %36 = vector.shape_cast %35 : vector<128xf32> to vector<1x128xf32>
    %cst_20 = arith.constant 1.000000e+00 : f32
    %cst_21 = arith.constant 0.000000e+00 : f32
    %37 = vector.broadcast %cst_20 : f32 to vector<2x128xf32>
    %38 = vector.broadcast %cst_21 : f32 to vector<2x128xf32>
    %39 = arith.select %30, %37, %38 : vector<2x128xi1>, vector<2x128xf32>
    %cst_22 = arith.constant dense<0.000000e+00> : vector<128xf32>
    %40 = vector.multi_reduction <add>, %39, %cst_22 [0] : vector<2x128xf32> to vector<128xf32>
    %41 = vector.shape_cast %40 : vector<128xf32> to vector<1x128xf32>
    %c0_23 = arith.constant 0 : index
    %c0_24 = arith.constant 0 : index
    %c0_25 = arith.constant 0 : index
    %c0_26 = arith.constant 0 : index
    %c0_27 = arith.constant 0 : index
    %42 = vector.load %arg5[%c0_23, %c0_24, %c0_25, %c0_26, %c0_27] : memref<1x1x4x1x128xf32, #tpu.memory_space<vmem>>, vector<1x1x1x1x128xf32>
    %43 = vector.shape_cast %42 : vector<1x1x1x1x128xf32> to vector<1x128xf32>
    %44 = arith.addf %43, %34 : vector<1x128xf32>
    %c0_28 = arith.constant 0 : index
    %c0_29 = arith.constant 0 : index
    %c0_30 = arith.constant 0 : index
    %c0_31 = arith.constant 0 : index
    %c0_32 = arith.constant 0 : index
    %45 = vector.load %arg5[%c0_28, %c0_29, %c0_30, %c0_31, %c0_32] : memref<1x1x4x1x128xf32, #tpu.memory_space<vmem>>, vector<1x1x1x1x128xf32>
    %46 = vector.shape_cast %45 : vector<1x1x1x1x128xf32> to vector<1x128xf32>
    %47 = vector.shape_cast %44 : vector<1x128xf32> to vector<1x1x1x1x128xf32>
    tpu.vector_store %arg5[%c0_28, %c0_29, %c0_30, %c0_31, %c0_32], %47 {strides = array<i32>} : memref<1x1x4x1x128xf32, #tpu.memory_space<vmem>>, vector<1x1x1x1x128xf32>,
    %c0_33 = arith.constant 0 : index
    %c0_34 = arith.constant 0 : index
    %c0_35 = arith.constant 0 : index
    %c0_36 = arith.constant 0 : index
    %c0_37 = arith.constant 0 : index
    %48 = vector.load %arg6[%c0_33, %c0_34, %c0_35, %c0_36, %c0_37] : memref<1x1x4x1x128xf32, #tpu.memory_space<vmem>>, vector<1x1x1x1x128xf32>
    %49 = vector.shape_cast %48 : vector<1x1x1x1x128xf32> to vector<1x128xf32>
    %50 = arith.addf %49, %36 : vector<1x128xf32>
    %c0_38 = arith.constant 0 : index
    %c0_39 = arith.constant 0 : index
    %c0_40 = arith.constant 0 : index
    %c0_41 = arith.constant 0 : index
    %c0_42 = arith.constant 0 : index
    %51 = vector.load %arg6[%c0_38, %c0_39, %c0_40, %c0_41, %c0_42] : memref<1x1x4x1x128xf32, #tpu.memory_space<vmem>>, vector<1x1x1x1x128xf32>
    %52 = vector.shape_cast %51 : vector<1x1x1x1x128xf32> to vector<1x128xf32>
    %53 = vector.shape_cast %50 : vector<1x128xf32> to vector<1x1x1x1x128xf32>
    tpu.vector_store %arg6[%c0_38, %c0_39, %c0_40, %c0_41, %c0_42], %53 {strides = array<i32>} : memref<1x1x4x1x128xf32, #tpu.memory_space<vmem>>, vector<1x1x1x1x128xf32>,
    %c0_43 = arith.constant 0 : index
    %c0_44 = arith.constant 0 : index
    %c0_45 = arith.constant 0 : index
    %c0_46 = arith.constant 0 : index
    %c0_47 = arith.constant 0 : index
    %54 = vector.load %arg7[%c0_43, %c0_44, %c0_45, %c0_46, %c0_47] : memref<1x1x4x1x128xf32, #tpu.memory_space<vmem>>, vector<1x1x1x1x128xf32>
    %55 = vector.shape_cast %54 : vector<1x1x1x1x128xf32> to vector<1x128xf32>
    %56 = arith.addf %55, %41 : vector<1x128xf32>
    %c0_48 = arith.constant 0 : index
    %c0_49 = arith.constant 0 : index
    %c0_50 = arith.constant 0 : index
    %c0_51 = arith.constant 0 : index
    %c0_52 = arith.constant 0 : index
    %57 = vector.load %arg7[%c0_48, %c0_49, %c0_50, %c0_51, %c0_52] : memref<1x1x4x1x128xf32, #tpu.memory_space<vmem>>, vector<1x1x1x1x128xf32>
    %58 = vector.shape_cast %57 : vector<1x1x1x1x128xf32> to vector<1x128xf32>
    %59 = vector.shape_cast %56 : vector<1x128xf32> to vector<1x1x1x1x128xf32>
    tpu.vector_store %arg7[%c0_48, %c0_49, %c0_50, %c0_51, %c0_52], %59 {strides = array<i32>} : memref<1x1x4x1x128xf32, #tpu.memory_space<vmem>>, vector<1x1x1x1x128xf32>,
    %60 = arith.mulf %19, %27 : vector<2x128xf32>
    %c1_i32 = arith.constant 1 : i32
    %61 = vector.broadcast %c1_i32 : i32 to vector<2x128xi32>
    %62 = arith.cmpi eq, %4, %61 : vector<2x128xi32>
    %cst_53 = arith.constant 0.000000e+00 : f32
    %63 = vector.broadcast %cst_53 : f32 to vector<2x128xf32>
    %64 = arith.select %62, %60, %63 : vector<2x128xi1>, vector<2x128xf32>
    %cst_54 = arith.constant dense<0.000000e+00> : vector<128xf32>
    %65 = vector.multi_reduction <add>, %64, %cst_54 [0] : vector<2x128xf32> to vector<128xf32>
    %66 = vector.shape_cast %65 : vector<128xf32> to vector<1x128xf32>
    %cst_55 = arith.constant dense<0.000000e+00> : vector<128xf32>
    %67 = vector.multi_reduction <add>, %60, %cst_55 [0] : vector<2x128xf32> to vector<128xf32>
    %68 = vector.shape_cast %67 : vector<128xf32> to vector<1x128xf32>
    %cst_56 = arith.constant 1.000000e+00 : f32
    %cst_57 = arith.constant 0.000000e+00 : f32
    %69 = vector.broadcast %cst_56 : f32 to vector<2x128xf32>
    %70 = vector.broadcast %cst_57 : f32 to vector<2x128xf32>
    %71 = arith.select %62, %69, %70 : vector<2x128xi1>, vector<2x128xf32>
    %cst_58 = arith.constant dense<0.000000e+00> : vector<128xf32>
    %72 = vector.multi_reduction <add>, %71, %cst_58 [0] : vector<2x128xf32> to vector<128xf32>
    %73 = vector.shape_cast %72 : vector<128xf32> to vector<1x128xf32>
    %c0_59 = arith.constant 0 : index
    %c0_60 = arith.constant 0 : index
    %c1_61 = arith.constant 1 : index
    %c0_62 = arith.constant 0 : index
    %c0_63 = arith.constant 0 : index
    %74 = vector.load %arg5[%c0_59, %c0_60, %c1_61, %c0_62, %c0_63] : memref<1x1x4x1x128xf32, #tpu.memory_space<vmem>>, vector<1x1x1x1x128xf32>
    %75 = vector.shape_cast %74 : vector<1x1x1x1x128xf32> to vector<1x128xf32>
    %76 = arith.addf %75, %66 : vector<1x128xf32>
    %c0_64 = arith.constant 0 : index
    %c0_65 = arith.constant 0 : index
    %c1_66 = arith.constant 1 : index
    %c0_67 = arith.constant 0 : index
    %c0_68 = arith.constant 0 : index
    %77 = vector.load %arg5[%c0_64, %c0_65, %c1_66, %c0_67, %c0_68] : memref<1x1x4x1x128xf32, #tpu.memory_space<vmem>>, vector<1x1x1x1x128xf32>
    %78 = vector.shape_cast %77 : vector<1x1x1x1x128xf32> to vector<1x128xf32>
    %79 = vector.shape_cast %76 : vector<1x128xf32> to vector<1x1x1x1x128xf32>
    tpu.vector_store %arg5[%c0_64, %c0_65, %c1_66, %c0_67, %c0_68], %79 {strides = array<i32>} : memref<1x1x4x1x128xf32, #tpu.memory_space<vmem>>, vector<1x1x1x1x128xf32>,
    %c0_69 = arith.constant 0 : index
    %c0_70 = arith.constant 0 : index
    %c1_71 = arith.constant 1 : index
    %c0_72 = arith.constant 0 : index
    %c0_73 = arith.constant 0 : index
    %80 = vector.load %arg6[%c0_69, %c0_70, %c1_71, %c0_72, %c0_73] : memref<1x1x4x1x128xf32, #tpu.memory_space<vmem>>, vector<1x1x1x1x128xf32>
    %81 = vector.shape_cast %80 : vector<1x1x1x1x128xf32> to vector<1x128xf32>
    %82 = arith.addf %81, %68 : vector<1x128xf32>
    %c0_74 = arith.constant 0 : index
    %c0_75 = arith.constant 0 : index
    %c1_76 = arith.constant 1 : index
    %c0_77 = arith.constant 0 : index
    %c0_78 = arith.constant 0 : index
    %83 = vector.load %arg6[%c0_74, %c0_75, %c1_76, %c0_77, %c0_78] : memref<1x1x4x1x128xf32, #tpu.memory_space<vmem>>, vector<1x1x1x1x128xf32>
    %84 = vector.shape_cast %83 : vector<1x1x1x1x128xf32> to vector<1x128xf32>
    %85 = vector.shape_cast %82 : vector<1x128xf32> to vector<1x1x1x1x128xf32>
    tpu.vector_store %arg6[%c0_74, %c0_75, %c1_76, %c0_77, %c0_78], %85 {strides = array<i32>} : memref<1x1x4x1x128xf32, #tpu.memory_space<vmem>>, vector<1x1x1x1x128xf32>,
    %c0_79 = arith.constant 0 : index
    %c0_80 = arith.constant 0 : index
    %c1_81 = arith.constant 1 : index
    %c0_82 = arith.constant 0 : index
    %c0_83 = arith.constant 0 : index
    %86 = vector.load %arg7[%c0_79, %c0_80, %c1_81, %c0_82, %c0_83] : memref<1x1x4x1x128xf32, #tpu.memory_space<vmem>>, vector<1x1x1x1x128xf32>
    %87 = vector.shape_cast %86 : vector<1x1x1x1x128xf32> to vector<1x128xf32>
    %88 = arith.addf %87, %73 : vector<1x128xf32>
    %c0_84 = arith.constant 0 : index
    %c0_85 = arith.constant 0 : index
    %c1_86 = arith.constant 1 : index
    %c0_87 = arith.constant 0 : index
    %c0_88 = arith.constant 0 : index
    %89 = vector.load %arg7[%c0_84, %c0_85, %c1_86, %c0_87, %c0_88] : memref<1x1x4x1x128xf32, #tpu.memory_space<vmem>>, vector<1x1x1x1x128xf32>
    %90 = vector.shape_cast %89 : vector<1x1x1x1x128xf32> to vector<1x128xf32>
    %91 = vector.shape_cast %88 : vector<1x128xf32> to vector<1x1x1x1x128xf32>
    tpu.vector_store %arg7[%c0_84, %c0_85, %c1_86, %c0_87, %c0_88], %91 {strides = array<i32>} : memref<1x1x4x1x128xf32, #tpu.memory_space<vmem>>, vector<1x1x1x1x128xf32>,
    %92 = arith.mulf %21, %27 : vector<2x128xf32>
    %c2_i32 = arith.constant 2 : i32
    %93 = vector.broadcast %c2_i32 : i32 to vector<2x128xi32>
    %94 = arith.cmpi eq, %4, %93 : vector<2x128xi32>
    %cst_89 = arith.constant 0.000000e+00 : f32
    %95 = vector.broadcast %cst_89 : f32 to vector<2x128xf32>
    %96 = arith.select %94, %92, %95 : vector<2x128xi1>, vector<2x128xf32>
    %cst_90 = arith.constant dense<0.000000e+00> : vector<128xf32>
    %97 = vector.multi_reduction <add>, %96, %cst_90 [0] : vector<2x128xf32> to vector<128xf32>
    %98 = vector.shape_cast %97 : vector<128xf32> to vector<1x128xf32>
    %cst_91 = arith.constant dense<0.000000e+00> : vector<128xf32>
    %99 = vector.multi_reduction <add>, %92, %cst_91 [0] : vector<2x128xf32> to vector<128xf32>
    %100 = vector.shape_cast %99 : vector<128xf32> to vector<1x128xf32>
    %cst_92 = arith.constant 1.000000e+00 : f32
    %cst_93 = arith.constant 0.000000e+00 : f32
    %101 = vector.broadcast %cst_92 : f32 to vector<2x128xf32>
    %102 = vector.broadcast %cst_93 : f32 to vector<2x128xf32>
    %103 = arith.select %94, %101, %102 : vector<2x128xi1>, vector<2x128xf32>
    %cst_94 = arith.constant dense<0.000000e+00> : vector<128xf32>
    %104 = vector.multi_reduction <add>, %103, %cst_94 [0] : vector<2x128xf32> to vector<128xf32>
    %105 = vector.shape_cast %104 : vector<128xf32> to vector<1x128xf32>
    %c0_95 = arith.constant 0 : index
    %c0_96 = arith.constant 0 : index
    %c2_97 = arith.constant 2 : index
    %c0_98 = arith.constant 0 : index
    %c0_99 = arith.constant 0 : index
    %106 = vector.load %arg5[%c0_95, %c0_96, %c2_97, %c0_98, %c0_99] : memref<1x1x4x1x128xf32, #tpu.memory_space<vmem>>, vector<1x1x1x1x128xf32>
    %107 = vector.shape_cast %106 : vector<1x1x1x1x128xf32> to vector<1x128xf32>
    %108 = arith.addf %107, %98 : vector<1x128xf32>
    %c0_100 = arith.constant 0 : index
    %c0_101 = arith.constant 0 : index
    %c2_102 = arith.constant 2 : index
    %c0_103 = arith.constant 0 : index
    %c0_104 = arith.constant 0 : index
    %109 = vector.load %arg5[%c0_100, %c0_101, %c2_102, %c0_103, %c0_104] : memref<1x1x4x1x128xf32, #tpu.memory_space<vmem>>, vector<1x1x1x1x128xf32>
    %110 = vector.shape_cast %109 : vector<1x1x1x1x128xf32> to vector<1x128xf32>
    %111 = vector.shape_cast %108 : vector<1x128xf32> to vector<1x1x1x1x128xf32>
    tpu.vector_store %arg5[%c0_100, %c0_101, %c2_102, %c0_103, %c0_104], %111 {strides = array<i32>} : memref<1x1x4x1x128xf32, #tpu.memory_space<vmem>>, vector<1x1x1x1x128xf32>,
    %c0_105 = arith.constant 0 : index
    %c0_106 = arith.constant 0 : index
    %c2_107 = arith.constant 2 : index
    %c0_108 = arith.constant 0 : index
    %c0_109 = arith.constant 0 : index
    %112 = vector.load %arg6[%c0_105, %c0_106, %c2_107, %c0_108, %c0_109] : memref<1x1x4x1x128xf32, #tpu.memory_space<vmem>>, vector<1x1x1x1x128xf32>
    %113 = vector.shape_cast %112 : vector<1x1x1x1x128xf32> to vector<1x128xf32>
    %114 = arith.addf %113, %100 : vector<1x128xf32>
    %c0_110 = arith.constant 0 : index
    %c0_111 = arith.constant 0 : index
    %c2_112 = arith.constant 2 : index
    %c0_113 = arith.constant 0 : index
    %c0_114 = arith.constant 0 : index
    %115 = vector.load %arg6[%c0_110, %c0_111, %c2_112, %c0_113, %c0_114] : memref<1x1x4x1x128xf32, #tpu.memory_space<vmem>>, vector<1x1x1x1x128xf32>
    %116 = vector.shape_cast %115 : vector<1x1x1x1x128xf32> to vector<1x128xf32>
    %117 = vector.shape_cast %114 : vector<1x128xf32> to vector<1x1x1x1x128xf32>
    tpu.vector_store %arg6[%c0_110, %c0_111, %c2_112, %c0_113, %c0_114], %117 {strides = array<i32>} : memref<1x1x4x1x128xf32, #tpu.memory_space<vmem>>, vector<1x1x1x1x128xf32>,
    %c0_115 = arith.constant 0 : index
    %c0_116 = arith.constant 0 : index
    %c2_117 = arith.constant 2 : index
    %c0_118 = arith.constant 0 : index
    %c0_119 = arith.constant 0 : index
    %118 = vector.load %arg7[%c0_115, %c0_116, %c2_117, %c0_118, %c0_119] : memref<1x1x4x1x128xf32, #tpu.memory_space<vmem>>, vector<1x1x1x1x128xf32>
    %119 = vector.shape_cast %118 : vector<1x1x1x1x128xf32> to vector<1x128xf32>
    %120 = arith.addf %119, %105 : vector<1x128xf32>
    %c0_120 = arith.constant 0 : index
    %c0_121 = arith.constant 0 : index
    %c2_122 = arith.constant 2 : index
    %c0_123 = arith.constant 0 : index
    %c0_124 = arith.constant 0 : index
    %121 = vector.load %arg7[%c0_120, %c0_121, %c2_122, %c0_123, %c0_124] : memref<1x1x4x1x128xf32, #tpu.memory_space<vmem>>, vector<1x1x1x1x128xf32>
    %122 = vector.shape_cast %121 : vector<1x1x1x1x128xf32> to vector<1x128xf32>
    %123 = vector.shape_cast %120 : vector<1x128xf32> to vector<1x1x1x1x128xf32>
    tpu.vector_store %arg7[%c0_120, %c0_121, %c2_122, %c0_123, %c0_124], %123 {strides = array<i32>} : memref<1x1x4x1x128xf32, #tpu.memory_space<vmem>>, vector<1x1x1x1x128xf32>,
    %124 = arith.mulf %23, %27 : vector<2x128xf32>
    %c3_i32 = arith.constant 3 : i32
    %125 = vector.broadcast %c3_i32 : i32 to vector<2x128xi32>
    %126 = arith.cmpi eq, %4, %125 : vector<2x128xi32>
    %cst_125 = arith.constant 0.000000e+00 : f32
    %127 = vector.broadcast %cst_125 : f32 to vector<2x128xf32>
    %128 = arith.select %126, %124, %127 : vector<2x128xi1>, vector<2x128xf32>
    %cst_126 = arith.constant dense<0.000000e+00> : vector<128xf32>
    %129 = vector.multi_reduction <add>, %128, %cst_126 [0] : vector<2x128xf32> to vector<128xf32>
    %130 = vector.shape_cast %129 : vector<128xf32> to vector<1x128xf32>
    %cst_127 = arith.constant dense<0.000000e+00> : vector<128xf32>
    %131 = vector.multi_reduction <add>, %124, %cst_127 [0] : vector<2x128xf32> to vector<128xf32>
    %132 = vector.shape_cast %131 : vector<128xf32> to vector<1x128xf32>
    %cst_128 = arith.constant 1.000000e+00 : f32
    %cst_129 = arith.constant 0.000000e+00 : f32
    %133 = vector.broadcast %cst_128 : f32 to vector<2x128xf32>
    %134 = vector.broadcast %cst_129 : f32 to vector<2x128xf32>
    %135 = arith.select %126, %133, %134 : vector<2x128xi1>, vector<2x128xf32>
    %cst_130 = arith.constant dense<0.000000e+00> : vector<128xf32>
    %136 = vector.multi_reduction <add>, %135, %cst_130 [0] : vector<2x128xf32> to vector<128xf32>
    %137 = vector.shape_cast %136 : vector<128xf32> to vector<1x128xf32>
    %c0_131 = arith.constant 0 : index
    %c0_132 = arith.constant 0 : index
    %c3_133 = arith.constant 3 : index
    %c0_134 = arith.constant 0 : index
    %c0_135 = arith.constant 0 : index
    %138 = vector.load %arg5[%c0_131, %c0_132, %c3_133, %c0_134, %c0_135] : memref<1x1x4x1x128xf32, #tpu.memory_space<vmem>>, vector<1x1x1x1x128xf32>
    %139 = vector.shape_cast %138 : vector<1x1x1x1x128xf32> to vector<1x128xf32>
    %140 = arith.addf %139, %130 : vector<1x128xf32>
    %c0_136 = arith.constant 0 : index
    %c0_137 = arith.constant 0 : index
    %c3_138 = arith.constant 3 : index
    %c0_139 = arith.constant 0 : index
    %c0_140 = arith.constant 0 : index
    %141 = vector.load %arg5[%c0_136, %c0_137, %c3_138, %c0_139, %c0_140] : memref<1x1x4x1x128xf32, #tpu.memory_space<vmem>>, vector<1x1x1x1x128xf32>
    %142 = vector.shape_cast %141 : vector<1x1x1x1x128xf32> to vector<1x128xf32>
    %143 = vector.shape_cast %140 : vector<1x128xf32> to vector<1x1x1x1x128xf32>
    tpu.vector_store %arg5[%c0_136, %c0_137, %c3_138, %c0_139, %c0_140], %143 {strides = array<i32>} : memref<1x1x4x1x128xf32, #tpu.memory_space<vmem>>, vector<1x1x1x1x128xf32>,
    %c0_141 = arith.constant 0 : index
    %c0_142 = arith.constant 0 : index
    %c3_143 = arith.constant 3 : index
    %c0_144 = arith.constant 0 : index
    %c0_145 = arith.constant 0 : index
    %144 = vector.load %arg6[%c0_141, %c0_142, %c3_143, %c0_144, %c0_145] : memref<1x1x4x1x128xf32, #tpu.memory_space<vmem>>, vector<1x1x1x1x128xf32>
    %145 = vector.shape_cast %144 : vector<1x1x1x1x128xf32> to vector<1x128xf32>
    %146 = arith.addf %145, %132 : vector<1x128xf32>
    %c0_146 = arith.constant 0 : index
    %c0_147 = arith.constant 0 : index
    %c3_148 = arith.constant 3 : index
    %c0_149 = arith.constant 0 : index
    %c0_150 = arith.constant 0 : index
    %147 = vector.load %arg6[%c0_146, %c0_147, %c3_148, %c0_149, %c0_150] : memref<1x1x4x1x128xf32, #tpu.memory_space<vmem>>, vector<1x1x1x1x128xf32>
    %148 = vector.shape_cast %147 : vector<1x1x1x1x128xf32> to vector<1x128xf32>
    %149 = vector.shape_cast %146 : vector<1x128xf32> to vector<1x1x1x1x128xf32>
    tpu.vector_store %arg6[%c0_146, %c0_147, %c3_148, %c0_149, %c0_150], %149 {strides = array<i32>} : memref<1x1x4x1x128xf32, #tpu.memory_space<vmem>>, vector<1x1x1x1x128xf32>,
    %c0_151 = arith.constant 0 : index
    %c0_152 = arith.constant 0 : index
    %c3_153 = arith.constant 3 : index
    %c0_154 = arith.constant 0 : index
    %c0_155 = arith.constant 0 : index
    %150 = vector.load %arg7[%c0_151, %c0_152, %c3_153, %c0_154, %c0_155] : memref<1x1x4x1x128xf32, #tpu.memory_space<vmem>>, vector<1x1x1x1x128xf32>
    %151 = vector.shape_cast %150 : vector<1x1x1x1x128xf32> to vector<1x128xf32>
    %152 = arith.addf %151, %137 : vector<1x128xf32>
    %c0_156 = arith.constant 0 : index
    %c0_157 = arith.constant 0 : index
    %c3_158 = arith.constant 3 : index
    %c0_159 = arith.constant 0 : index
    %c0_160 = arith.constant 0 : index
    %153 = vector.load %arg7[%c0_156, %c0_157, %c3_158, %c0_159, %c0_160] : memref<1x1x4x1x128xf32, #tpu.memory_space<vmem>>, vector<1x1x1x1x128xf32>
    %154 = vector.shape_cast %153 : vector<1x1x1x1x128xf32> to vector<1x128xf32>
    %155 = vector.shape_cast %152 : vector<1x128xf32> to vector<1x1x1x1x128xf32>
    tpu.vector_store %arg7[%c0_156, %c0_157, %c3_158, %c0_159, %c0_160], %155 {strides = array<i32>} : memref<1x1x4x1x128xf32, #tpu.memory_space<vmem>>, vector<1x1x1x1x128xf32>,
    return
  }
  func.func @transform_0(%arg0: i32, %arg1: i32, %arg2: i32) -> (i32, i32, i32, i32) {
    %c1_i32 = arith.constant 1 : i32
    %0 = arith.muli %arg0, %c1_i32 : i32
    %1 = arith.addi %0, %arg2 : i32
    %c0_i32 = arith.constant 0 : i32
    %c0_i32_0 = arith.constant 0 : i32
    %c0_i32_1 = arith.constant 0 : i32
    return %arg1, %c0_i32, %1, %c0_i32_0 : i32, i32, i32, i32
  }
  func.func @transform_1(%arg0: i32, %arg1: i32, %arg2: i32) -> (i32, i32, i32, i32) {
    %c1_i32 = arith.constant 1 : i32
    %0 = arith.muli %arg0, %c1_i32 : i32
    %1 = arith.addi %0, %arg2 : i32
    %c0_i32 = arith.constant 0 : i32
    %c0_i32_0 = arith.constant 0 : i32
    %c0_i32_1 = arith.constant 0 : i32
    return %arg1, %c0_i32, %1, %c0_i32_0 : i32, i32, i32, i32
  }
  func.func @transform_2(%arg0: i32, %arg1: i32, %arg2: i32) -> (i32, i32, i32, i32, i32) {
    %c0_i32 = arith.constant 0 : i32
    %c0_i32_0 = arith.constant 0 : i32
    %c0_i32_1 = arith.constant 0 : i32
    %c0_i32_2 = arith.constant 0 : i32
    return %arg0, %arg1, %c0_i32, %c0_i32_0, %c0_i32_1 : i32, i32, i32, i32, i32
  }
  func.func @transform_3(%arg0: i32, %arg1: i32, %arg2: i32) -> (i32, i32, i32, i32, i32) {
    %c0_i32 = arith.constant 0 : i32
    %c0_i32_0 = arith.constant 0 : i32
    %c0_i32_1 = arith.constant 0 : i32
    %c0_i32_2 = arith.constant 0 : i32
    return %arg0, %arg1, %c0_i32, %c0_i32_0, %c0_i32_1 : i32, i32, i32, i32, i32
  }
  func.func @transform_4(%arg0: i32, %arg1: i32, %arg2: i32) -> (i32, i32, i32, i32, i32) {
    %c0_i32 = arith.constant 0 : i32
    %c0_i32_0 = arith.constant 0 : i32
    %c0_i32_1 = arith.constant 0 : i32
    %c0_i32_2 = arith.constant 0 : i32
    return %arg0, %arg1, %c0_i32, %c0_i32_0, %c0_i32_1 : i32, i32, i32, i32, i32
  }
}

</mosaic_0001>

<bundles_post_ra>
// kernel: tpu_custom_call.1
= control target key start
LH: loop header
LB: loop body
LE: loop exit
PB: predicated region body
PF: predicated region fallthrough
CT: control target
= control target key end

     0   :  { %s1531_s0 = inlined_call_operand.hbm [shape: f32[2,4,2,128], index: 0, kind: input, shape index: {}]   ;;  %s1532_s1 = inlined_call_operand.hbm [shape: s32[2,1,2,128], index: 1, kind: input, shape index: {}]   ;;  %s1533_s2 = inlined_call_operand.hbm [shape: f32[1,2,4,1,128], index: 2, kind: output, shape index: {0}]   ;;  %s1534_s3 = inlined_call_operand.hbm [shape: f32[1,2,4,1,128], index: 3, kind: output, shape index: {1}]   ;;  %s1535_s4 = inlined_call_operand.hbm [shape: f32[1,2,4,1,128], index: 4, kind: output, shape index: {2}]  }
   0x1   :  { %1539 = sst [smem:[#allocation15_spill]] %s1531_s0 }
   0x2   :  { %10 = vsyncpa [#allocation3], 0 }
   0x3   :  { %12 = vsyncpa [#allocation3 + $0x1], 0 }
   0x4   :  { %13 = vsyncpa [#allocation6], 0 }
   0x5   :  { %15 = vsyncpa [#allocation6 + $0x1], 0 }
   0x6   :  { %16 = vsyncpa [#allocation4], 0 }
   0x7   :  { %18 = vsyncpa [#allocation4 + $0x1], 0 }
   0x8   :  { %19 = vsyncpa [#allocation9], 0 }
   0x9   :  { %21 = vsyncpa [#allocation9 + $0x1], 0  ;;  %s1129_s15 = smov 0   ;;  %s1131_s16 = smov 0  }
   0xa   :  { %s1133_s17 = smov 0   ;;  %s1135_s18 = smov 0  }
   0xb   :  { %s1137_s19 = smov 0   ;;  %s1139_s20 = smov 0  }
   0xc LB: > { %s1160_s21 = sadd.s32 4294967295, %s1092_s20   ;;  %s1537_s22 = sadd.s32 4294967294, %s1092_s20   ;;  %s1092_s20 = sphi %s1139_s20, %s27_s20   ;;  %s1088_s19 = sphi %s1137_s19, %s1558_s19   ;;  %s1084_s18 = sphi %s1135_s18, %s1557_s18   ;;  %s1080_s17 = sphi %s1133_s17, %s1556_s17   ;;  %s1076_s16 = sphi %s1131_s16, %s1555_s16   ;;  %s1072_s15 = sphi %s1129_s15, %s1554_s15  }
   0xd   : > { %s42_s23 = sadd.s32 1, %s1088_s19  ;;  %s57_s24 = sadd.s32 1, %s1080_s17 }
   0xe   : > { %p44_p0 = scmp.ge.s32.totalorder %s42_s23, 2  ;;  %p64_p1 = scmp.ne.s32.totalorder %s1080_s17, %s1076_s16 }
   0xf   : > { %p65_p2 = scmp.eq.s32.totalorder %s1092_s20, 0  ;;  %p70_p3 = scmp.ne.s32.totalorder %s1076_s16, %s1072_s15 }
  0x10   : > { %s1560_s23 = smov (%p44_p0, %s42_s23), 0  ;;  %p71_p5 = scmp.eq.s32.totalorder %s1160_s21, 0 }
  0x11   : > { %p1172_p4 = por %p65_p2, %p64_p1  ;;  %s52_s26 = ssub.s32 %s1088_s19, %s1560_s23 }
  0x12   : > { %p126_p6 = scmp.eq.s32.totalorder %s1160_s21, 1  ;;  %p55_p7 = scmp.eq.s32.totalorder %s52_s26, 0 }
  0x13   : > { %p1180_p8 = por %p71_p5, %p70_p3  ;;  %p132_p10 = scmp.eq.s32.totalorder %s1537_s22, 1 }
  0x14   : > { %p1184_p9 = por %p126_p6, %p64_p1  ;;  %p821_p13 = scmp.lt.s32.totalorder %s1092_s20, 2 }
  0x15   : > { %s1541_s27 = scalar_select %p1180_p8, 1, 0 }
  0x16   : > { %s1542_s28 = scalar_select %p1184_p9, 1, 0 }
  0x17   : > { %s1191_s29 = scalar_select %p55_p7, %s1080_s17, %s57_s24  }
  0x18   : > { %p1193_p11 = por %p132_p10, %p70_p3  ;;  %s1200_s5 = sand.u32 1, %s1080_s17  }
  0x19   : > { %s747_s6 = sshll.u32 %s1200_s5, 3  ;;  %s790_s7 = sshll.u32 %s1088_s19, 7 }
  0x1a   : > { %s1543_s30 = scalar_select %p1193_p11, 1, 0 }
  0x1b   : > { %s1544_s0 = sld [smem:[#allocation15_spill]]  ;;  %s212_s11 = scalar_lea.vmem [#allocation2], %s747_s6 }
  0x1c   : > { %s221_s12 = sshll.u32 %s212_s11, 4  ;;  %p1213_p0 = pnand %p821_p13, %p1172_p4  ;;  %s1209_s12 = int_to_ptr.vmem [resolvable:$true] %s221_s12 }
  0x1d   : > { %s209_s14 = scalar_lea.sflag [#allocation3], %s1200_s5 }
  0x1e   : > { %p888_p3 = pneg %p1213_p0 }
  0x21   : > { %s1207_s10 = scalar_lea.hbm %s1544_s0, %s790_s7  ;;  %s891_s25 = scalar_lea.hbm %s1544_s0, 256 }
  0x22   : > { %s886_s24 = scalar_lea.hbm %s1207_s10, 128  ;;  %p892_p4 = scmp.lt.u32.totalorder %s1207_s10, %s1544_s0 }
  0x23   : > { %p887_p2 = scmp.ne.s32.totalorder %s1207_s10, %s886_s24  ;;  %p893_p7 = scmp.lt.u32.totalorder %s891_s25, %s886_s24 }
  0x24   : > { %p895_p13 = scmp.lt.u32.totalorder %s886_s24, %s1207_s10 }
  0x25   : > { %p889_p5 = pnand %p888_p3, %p887_p2  ;;  %p894_p10 = por %p893_p7, %p892_p4 }
  0x27   : > { %p890_p6 = pneg %p889_p5  ;;  %p896_p12 = por %p895_p13, %p894_p10 }
  0x29   : > { %p897_p1 = pnand %p896_p12, %p890_p6 }
  0x2b   : > { %900 = shalt.err (!%p897_p1)
}
  0x2c   : > { %s901_s9 = scalar_lea.vmem %s1209_s12, 128  ;;  %s1094_s11 = smov [#allocation2]  }
  0x2d   : > { %p902_p2 = scmp.ne.s32.totalorder %s1209_s12, %s901_s9  ;;  %s906_s26 = sshll.u32 %s1094_s11, 4  ;;  %s907_s26 = int_to_ptr.vmem [resolvable:$false] %s906_s26 }
  0x2e   : > { %s908_s6 = scalar_lea.vmem %s907_s26, 256  ;;  %p909_p9 = scmp.lt.s32.totalorder %s1209_s12, %s907_s26 }
  0x2f   : > { %p904_p5 = pnand %p902_p2, %p888_p3  ;;  %p910_p4 = scmp.lt.s32.totalorder %s908_s6, %s901_s9 }
  0x31   : > { %p905_p11 = pneg %p904_p5  ;;  %p911_p7 = por %p910_p4, %p909_p9 }
  0x33   : > { %p912_p10 = pnand %p911_p7, %p905_p11 }
  0x35   : > { %915 = shalt.err (!%p912_p10)
}
  0x36   : > { %s1095_s24 = smov 32   ;;  %s1096_s25 = smov 2  }
  0x37   : > { %807 = dma.hbm_to_vmem [thread:$0]  (!%p1213_p0), %s1207_s10, 128, %s1209_s12, %s209_s14, %s1095_s24, %s1095_s24, %s1096_s25  }
  0x38   : > { %p249_p12 = scmp.lt.s32.totalorder %s1092_s20, 3  ;;  %s750_s7 = sshll.u32 %s1200_s5, 1 }
  0x39   : > { %s751_s8 = sshll.u32 %s1088_s19, 5  ;;  %p1546_p9 = scmp.ge.s32.totalorder %s1092_s20, 1 }
  0x3a   : > { %s1258_s6 = scalar_lea.hbm %s1532_s1, %s751_s8  ;;  %s235_s22 = scalar_lea.vmem [#allocation5], %s750_s7 }
  0x3b   : > { %p1251_p11 = pnand %p1546_p9, %p249_p12  ;;  %s244_s0 = sshll.u32 %s235_s22, 4  ;;  %s245_s0 = int_to_ptr.vmem [resolvable:$true] %s244_s0 }
  0x3c   : > { %s232_s10 = scalar_lea.sflag [#allocation6], %s1200_s5  ;;  %s916_s12 = scalar_lea.hbm %s1258_s6, 32 }
  0x3d   : > { %s1547_s9 = scalar_select %p1251_p11, 1, 0 }
  0x3e   : > { %p917_p1 = scmp.ne.s32.totalorder %s1258_s6, %s916_s12  ;;  %s921_s25 = scalar_lea.hbm %s1532_s1, 64 }
  0x3f   : > { %p922_p2 = scmp.lt.u32.totalorder %s1258_s6, %s1532_s1  ;;  %p923_p5 = scmp.lt.u32.totalorder %s921_s25, %s916_s12 }
  0x40   : > { %p919_p6 = pnand %p917_p1, %p888_p3  ;;  %p925_p7 = scmp.lt.u32.totalorder %s916_s12, %s1258_s6 }
  0x41   : > { %p924_p4 = por %p923_p5, %p922_p2 }
  0x42   : > { %p920_p13 = pneg %p919_p6 }
  0x43   : > { %p926_p10 = por %p925_p7, %p924_p4 }
  0x45   : > { %p927_p12 = pnand %p926_p10, %p920_p13 }
  0x47   : > { %930 = shalt.err (!%p927_p12)
}
  0x48   : > { %s931_s22 = scalar_lea.vmem %s245_s0, 32  ;;  %s1097_s5 = smov [#allocation5]  }
  0x49   : > { %p932_p9 = scmp.ne.s32.totalorder %s245_s0, %s931_s22  ;;  %s936_s7 = sshll.u32 %s1097_s5, 4  ;;  %s937_s7 = int_to_ptr.vmem [resolvable:$false] %s936_s7 }
  0x4a   : > { %s938_s26 = scalar_lea.vmem %s937_s7, 64  ;;  %p939_p8 = scmp.lt.s32.totalorder %s245_s0, %s937_s7 }
  0x4b   : > { %p934_p1 = pnand %p932_p9, %p888_p3  ;;  %p940_p11 = scmp.lt.s32.totalorder %s938_s26, %s931_s22 }
  0x4d   : > { %p935_p6 = pneg %p934_p1  ;;  %p941_p2 = por %p940_p11, %p939_p8 }
  0x4f   : > { %p942_p5 = pnand %p941_p2, %p935_p6 }
  0x51   : > { %945 = shalt.err (!%p942_p5)
}
  0x52   : > { %810 = dma.hbm_to_vmem [thread:$0]  (!%p1213_p0), %s1258_s6, 32, %s245_s0, %s232_s10  }
  0x53   : > { %p1548_p13 = scmp.ne.s32.totalorder %s1547_s9, 0 }
  0x54   : > { %s1283_s12 = sand.u32 (!%p1548_p13), 1, %s1076_s16   ;;  %p1549_p8 = scmp.ne.s32.totalorder (!%p1548_p13), %s1541_s27, 0 }
  0x55   : > { %253 = sbr.rel (%p1548_p13) target bundleno = 223 (0xdf), region = 28  ;;  %s753_s14 = sshll.u32 (!%p1548_p13), %s1283_s12, 3 }
  0x56   : > { %s256_s24 = scalar_lea.sflag (!%p1548_p13), [#allocation3], %s1283_s12  ;;  %s1287_s25 = scalar_lea.vmem (!%p1548_p13), [#allocation2], %s753_s14 }
  0x5c   : > { %1055 = dma.done.wait (%p1549_p8), %s256_s24, 128  }
  0x5d   : > { %1057 = vsyncadd (%p1549_p8), %s256_s24, 4294967168  ;;  %s754_s0 = sshll.u32 %s1283_s12, 1  ;;  %s265_s13 = scalar_lea.sflag [#allocation6], %s1283_s12 }
  0x5e   : > { %s268_s9 = scalar_lea.vmem [#allocation5], %s754_s0 }
  0x5f   : > { %1059 = dma.done.wait (%p1549_p8), %s265_s13, 32  }
  0x60   : > { %1061 = vsyncadd (%p1549_p8), %s265_s13, 4294967264  ;;  %s755_s6 = sshll.u32 %s1283_s12, 2  ;;  %v1098_v0 = vmov 0.0   ;;  %v327_v1 = vld [vmem:[%s1287_s25] sm:$0x3]  ;;  %vm356_vm0 = vcmask 1041408  }
  0x61   : > { %s1300_s10 = scalar_lea.vmem [#allocation8], %s755_s6  ;;  %s1306_s8 = scalar_lea.vmem [#allocation7], %s755_s6  ;;  %v758_v2 = vld [vmem:[%s1287_s25 + $0x2] sm:$0x3]  ;;  %v759_v3 = vld [vmem:[%s1287_s25 + $0x4] sm:$0x3] }
  0x62   : > { %318 = vst [vmem:[%s1300_s10] sm:$0x1] %v1098_v0  ;;  %319 = vst [vmem:[%s1300_s10 + $0x1] sm:$0x1] %v1098_v0  ;;  %s1312_s27 = scalar_lea.vmem [#allocation10], %s755_s6  ;;  %v334_v4 = vmax.f32 %v327_v1, %v758_v2  ;;  %v1321_v5 = vld [vmem:[%s268_s9] sm:$0x3] }
  0x63   : > { %320 = vst [vmem:[%s1300_s10 + $0x2] sm:$0x1] %v1098_v0  ;;  %321 = vst [vmem:[%s1300_s10 + $0x3] sm:$0x1] %v1098_v0  ;;  %v760_v6 = vld [vmem:[%s1287_s25 + $0x6] sm:$0x3] }
  0x64   : > { %314 = vst [vmem:[%s1306_s8] sm:$0x1] %v1098_v0  ;;  %315 = vst [vmem:[%s1306_s8 + $0x1] sm:$0x1] %v1098_v0  ;;  %v335_v7 = vmax.f32 %v334_v4, %v759_v3  ;;  %vm354_vm1 = vcmp.eq.s32.totalorder %v1321_v5, 0  ;;  %vm389_vm2 = vcmp.eq.s32.totalorder %v1321_v5, 1  ;;  %vm426_vm3 = vcmp.eq.s32.totalorder %v1321_v5, 2 }
  0x65   : > { %316 = vst [vmem:[%s1306_s8 + $0x2] sm:$0x1] %v1098_v0  ;;  %317 = vst [vmem:[%s1306_s8 + $0x3] sm:$0x1] %v1098_v0  ;;  %v371_v8 = vsel %vm354_vm1, 1.0, %v1098_v0  ;;  %v405_v9 = vsel %vm389_vm2, 1.0, %v1098_v0 }
  0x66   : > { %322 = vst [vmem:[%s1312_s27] sm:$0x1] %v1098_v0  ;;  %323 = vst [vmem:[%s1312_s27 + $0x1] sm:$0x1] %v1098_v0  ;;  %v336_v10 = vmax.f32 %v335_v7, %v760_v6  ;;  %v372_v11 = vsel %vm356_vm0, %v371_v8, 0.0  ;;  %v406_v12 = vsel %vm356_vm0, %v405_v9, 0.0  ;;  %v442_v15 = vsel %vm426_vm3, 1.0, %v1098_v0 }
  0x67   : > { %324 = vst [vmem:[%s1312_s27 + $0x2] sm:$0x1] %v1098_v0  ;;  %325 = vst [vmem:[%s1312_s27 + $0x3] sm:$0x1] %v1098_v0  ;;  %v373_v13 = vrot.slane %v372_v11, 4  ;;  %v407_v14 = vrot.slane %v406_v12, 4 }
  0x68   : > { %vm463_vm4 = vcmp.eq.s32.totalorder %v1321_v5, 3  ;;  %v337_v16 = vsub.f32 %v327_v1, %v336_v10  ;;  %v340_v17 = vsub.f32 %v758_v2, %v336_v10  ;;  %v343_v18 = vsub.f32 %v759_v3, %v336_v10  ;;  %s504_s11 = sand.u32 1, %s1160_s21   ;;  %s1366_s22 = sshll.u32 %s1084_s18, 6 }
  0x69   : > { %v346_v19 = vsub.f32 %v760_v6, %v336_v10  ;;  %v374_v20 = vadd.f32 %v373_v13, %v372_v11  ;;  %v408_v21 = vadd.f32 %v407_v14, %v406_v12  ;;  %v443_v22 = vsel %vm356_vm0, %v442_v15, 0.0  ;;  %s543_s5 = sshll.u32 %s1300_s10, 4  ;;  %s561_s18 = sshll.u32 %s1312_s27, 4  ;;  %s1380_s5 = int_to_ptr.vmem [resolvable:$true] %s543_s5  ;;  %s1392_s18 = int_to_ptr.vmem [resolvable:$true] %s561_s18 }
  0x6a   : > { %v479_v23 = vsel %vm463_vm4, 1.0, %v1098_v0  ;;  %v338_v24 = vmul.f32 1.442695, %v337_v16  ;;  %v341_v25 = vmul.f32 1.442695, %v340_v17  ;;  %v444_v30 = vrot.slane %v443_v22, 4  ;;  %s1378_s14 = scalar_lea.hbm %s1534_s3, %s1366_s22  ;;  %s1390_s13 = scalar_lea.hbm %s1535_s4, %s1366_s22 }
  0x6b   : > { %v344_v26 = vmul.f32 1.442695, %v343_v18  ;;  %v347_v27 = vmul.f32 1.442695, %v346_v19  ;;  %v375_v28 = vrot.slane %v374_v20, 2  ;;  %v409_v29 = vrot.slane %v408_v21, 2 }
  0x6c   : > { %876 = vpow2.f32 %v338_v24  ;;  %v480_v31 = vsel %vm356_vm0, %v479_v23, 0.0  ;;  %v445_v34 = vadd.f32 %v444_v30, %v443_v22  ;;  %s525_s24 = sshll.u32 %s1306_s8, 4  ;;  %s1409_s9 = scalar_lea.sflag [#allocation9], %s504_s11  ;;  %s1473_s24 = int_to_ptr.vmem [resolvable:$true] %s525_s24 }
  0x6d   : > { %878 = vpow2.f32 %v341_v25  ;;  %v376_v32 = vadd.f32 %v375_v28, %v374_v20  ;;  %v410_v33 = vadd.f32 %v409_v29, %v408_v21  ;;  %v481_v35 = vrot.slane %v480_v31, 4  ;;  %v385_v39 = vld [vmem:[%s1312_s27] sm:$0x1]  ;;  %v765_v40 = vld [vmem:[%s1312_s27 + $0x1] sm:$0x1]  ;;  %s946_s6 = scalar_lea.vmem %s1380_s5, 64 }
  0x6e   : > { %880 = vpow2.f32 %v344_v26  ;;  %v446_v38 = vrot.slane %v445_v34, 2  ;;  %v771_v49 = vld [vmem:[%s1312_s27 + $0x2] sm:$0x1]  ;;  %v777_v56 = vld [vmem:[%s1312_s27 + $0x3] sm:$0x1]  ;;  %p947_p0 = scmp.ne.s32.totalorder %s1380_s5, %s946_s6  ;;  %p1550_p3 = scmp.ne.s32.totalorder %s1542_s28, 0 }
  0x6f   : > { %882 = vpow2.f32 %v347_v27  ;;  %v377_v36 = vrot.slane %v376_v32, 1  ;;  %v411_v37 = vrot.slane %v410_v33, 1  ;;  %v482_v41 = vadd.f32 %v481_v35, %v480_v31 }
  0x70   : > { %v447_v44 = vadd.f32 %v446_v38, %v445_v34  ;;  %v763_v38 = vld [vmem:[%s1300_s10 + $0x1] sm:$0x1]  ;;  %p948_p11 = pnand %p947_p0, %p1550_p3 }
  0x71   : > { %v378_v42 = vadd.f32 %v377_v36, %v376_v32  ;;  %v412_v43 = vadd.f32 %v411_v37, %v410_v33  ;;  %v483_v45 = vrot.slane %v482_v41, 2  ;;  %v382_v37 = vld [vmem:[%s1300_s10] sm:$0x1] }
  0x72   : > { %v448_v48 = vrot.slane %v447_v44, 1  ;;  %p949_p4 = pneg %p948_p11 }
  0x73   : > { %v386_v46 = vadd.f32 %v385_v39, %v378_v42  ;;  %v423_v47 = vadd.f32 %v765_v40, %v412_v43  ;;  %v484_v50 = vadd.f32 %v483_v45, %v482_v41 }
  0x74   : > { %v449_v51 = vadd.f32 %v448_v48, %v447_v44  ;;  %v775_v48 = vld [vmem:[%s1300_s10 + $0x3] sm:$0x1] }
  0x75   : > { %387 = vst [vmem:[%s1312_s27] sm:$0x1] %v386_v46  ;;  %766 = vst [vmem:[%s1312_s27 + $0x1] sm:$0x1] %v423_v47  ;;  %v485_v53 = vrot.slane %v484_v50, 1  ;;  %v769_v46 = vld [vmem:[%s1300_s10 + $0x2] sm:$0x1] }
  0x76   : > { %v877_v52 = vpop.eup %876  ;;  %v460_v55 = vadd.f32 %v771_v49, %v449_v51 }
  0x77   : > { %v879_v54 = vpop.eup %878  ;;  %v486_v59 = vadd.f32 %v485_v53, %v484_v50 }
  0x78   : > { %v881_v57 = vpop.eup %880  ;;  %v349_v58 = vadd.f32 %v879_v54, %v877_v52  ;;  %772 = vst [vmem:[%s1312_s27 + $0x2] sm:$0x1] %v460_v55 }
  0x79   : > { %v883_v60 = vpop.eup %882  ;;  %v497_v62 = vadd.f32 %v777_v56, %v486_v59 }
  0x7a   : > { %v350_v61 = vadd.f32 %v881_v57, %v349_v58 }
  0x7b   : > { %778 = vst [vmem:[%s1312_s27 + $0x3] sm:$0x1] %v497_v62 }
  0x7c   : > { %v351_v63 = vadd.f32 %v883_v60, %v350_v61 }
  0x7e   : > { %884 = vrcp.f32 %v351_v63 }
  0x88   : > { %v885_v0 = vpop.eup %884 }
  0x89   : > { %v353_v1 = vmul.f32 %v885_v0, %v877_v52  ;;  %v388_v2 = vmul.f32 %v885_v0, %v879_v54  ;;  %v425_v3 = vmul.f32 %v885_v0, %v881_v57  ;;  %v462_v4 = vmul.f32 %v885_v0, %v883_v60 }
  0x8b   : > { %v364_v6 = vsel %vm356_vm0, %v353_v1, 0.0  ;;  %v398_v7 = vsel %vm356_vm0, %v388_v2, 0.0  ;;  %v435_v8 = vsel %vm356_vm0, %v425_v3, 0.0  ;;  %v472_v9 = vsel %vm356_vm0, %v462_v4, 0.0 }
  0x8c   : > { %v365_v10 = vrot.slane %v364_v6, 4  ;;  %v399_v11 = vrot.slane %v398_v7, 4  ;;  %v436_v12 = vrot.slane %v435_v8, 4  ;;  %v473_v13 = vrot.slane %v472_v9, 4 }
  0x8d   : > { %v355_v14 = vsel %vm354_vm1, %v353_v1, 0.0  ;;  %v390_v15 = vsel %vm389_vm2, %v388_v2, 0.0  ;;  %v427_v16 = vsel %vm426_vm3, %v425_v3, 0.0  ;;  %v464_v17 = vsel %vm463_vm4, %v462_v4, 0.0  ;;  %v1384_v2 = vld [vmem:[%s1306_s8] sm:$0x1] }
  0x8e   : > { %v366_v18 = vadd.f32 %v365_v10, %v364_v6  ;;  %v400_v19 = vadd.f32 %v399_v11, %v398_v7  ;;  %v437_v20 = vadd.f32 %v436_v12, %v435_v8  ;;  %v474_v21 = vadd.f32 %v473_v13, %v472_v9  ;;  %v1399_v7 = vld [vmem:[%s1306_s8 + $0x1] sm:$0x1]  ;;  %v1402_v8 = vld [vmem:[%s1306_s8 + $0x2] sm:$0x1]  ;;  %v1405_v9 = vld [vmem:[%s1306_s8 + $0x3] sm:$0x1] }
  0x8f   : > { %v357_v22 = vsel %vm356_vm0, %v355_v14, 0.0  ;;  %v391_v23 = vsel %vm356_vm0, %v390_v15, 0.0  ;;  %v428_v24 = vsel %vm356_vm0, %v427_v16, 0.0  ;;  %v465_v25 = vsel %vm356_vm0, %v464_v17, 0.0 }
  0x90   : > { %v367_v26 = vrot.slane %v366_v18, 2  ;;  %v401_v27 = vrot.slane %v400_v19, 2  ;;  %v438_v5 = vrot.slane %v437_v20, 2  ;;  %v475_v28 = vrot.slane %v474_v21, 2 }
  0x91   : > { %v358_v29 = vrot.slane %v357_v22, 4  ;;  %v392_v30 = vrot.slane %v391_v23, 4  ;;  %v429_v31 = vrot.slane %v428_v24, 4  ;;  %v466_v32 = vrot.slane %v465_v25, 4 }
  0x92   : > { %v368_v33 = vadd.f32 %v367_v26, %v366_v18  ;;  %v402_v34 = vadd.f32 %v401_v27, %v400_v19  ;;  %v439_v35 = vadd.f32 %v438_v5, %v437_v20  ;;  %v476_v36 = vadd.f32 %v475_v28, %v474_v21 }
  0x93   : > { %v359_v39 = vadd.f32 %v358_v29, %v357_v22  ;;  %v393_v40 = vadd.f32 %v392_v30, %v391_v23  ;;  %v430_v41 = vadd.f32 %v429_v31, %v428_v24  ;;  %v467_v42 = vadd.f32 %v466_v32, %v465_v25 }
  0x94   : > { %v369_v43 = vrot.slane %v368_v33, 1  ;;  %v403_v44 = vrot.slane %v402_v34, 1  ;;  %v440_v45 = vrot.slane %v439_v35, 1  ;;  %v477_v47 = vrot.slane %v476_v36, 1 }
  0x95   : > { %v360_v49 = vrot.slane %v359_v39, 2  ;;  %v394_v50 = vrot.slane %v393_v40, 2  ;;  %v431_v51 = vrot.slane %v430_v41, 2  ;;  %v468_v52 = vrot.slane %v467_v42, 2 }
  0x96   : > { %v370_v53 = vadd.f32 %v369_v43, %v368_v33  ;;  %v404_v54 = vadd.f32 %v403_v44, %v402_v34  ;;  %v441_v55 = vadd.f32 %v440_v45, %v439_v35  ;;  %v478_v56 = vadd.f32 %v477_v47, %v476_v36 }
  0x97   : > { %v361_v57 = vadd.f32 %v360_v49, %v359_v39  ;;  %v395_v58 = vadd.f32 %v394_v50, %v393_v40  ;;  %v432_v59 = vadd.f32 %v431_v51, %v430_v41  ;;  %v469_v60 = vadd.f32 %v468_v52, %v467_v42 }
  0x98   : > { %v383_v61 = vadd.f32 %v382_v37, %v370_v53  ;;  %v419_v62 = vadd.f32 %v763_v38, %v404_v54  ;;  %v456_v63 = vadd.f32 %v769_v46, %v441_v55  ;;  %v493_v0 = vadd.f32 %v775_v48, %v478_v56 }
  0x99   : > { %v362_v1 = vrot.slane %v361_v57, 1  ;;  %v396_v3 = vrot.slane %v395_v58, 1  ;;  %v433_v4 = vrot.slane %v432_v59, 1  ;;  %v470_v6 = vrot.slane %v469_v60, 1 }
  0x9a   : > { %384 = vst [vmem:[%s1300_s10] sm:$0x1] %v383_v61  ;;  %764 = vst [vmem:[%s1300_s10 + $0x1] sm:$0x1] %v419_v62 }
  0x9b   : > { %770 = vst [vmem:[%s1300_s10 + $0x2] sm:$0x1] %v456_v63  ;;  %776 = vst [vmem:[%s1300_s10 + $0x3] sm:$0x1] %v493_v0  ;;  %v363_v10 = vadd.f32 %v362_v1, %v361_v57  ;;  %v397_v11 = vadd.f32 %v396_v3, %v395_v58  ;;  %v434_v12 = vadd.f32 %v433_v4, %v432_v59  ;;  %s1099_s10 = smov [#allocation8]  }
  0x9c   : > { %v471_v13 = vadd.f32 %v470_v6, %v469_v60  ;;  %s950_s27 = sshll.u32 %s1099_s10, 4  ;;  %s951_s27 = int_to_ptr.vmem [resolvable:$false] %s950_s27 }
  0x9d   : > { %s952_s7 = scalar_lea.vmem %s951_s27, 128  ;;  %p953_p7 = scmp.lt.s32.totalorder %s1380_s5, %s951_s27 }
  0x9e   : > { %p954_p10 = scmp.lt.s32.totalorder %s952_s7, %s946_s6 }
  0xa0   : > { %p955_p12 = por %p954_p10, %p953_p7 }
  0xa2   : > { %p956_p9 = pnand %p955_p12, %p949_p4 }
  0xa4   : > { %959 = shalt.err (!%p956_p9)
}
  0xa5   : > { %s960_s21 = scalar_lea.hbm %s1378_s14, 64  ;;  %s964_s25 = scalar_lea.hbm %s1534_s3, 128 }
  0xa6   : > { %p961_p1 = scmp.ne.s32.totalorder %s1378_s14, %s960_s21  ;;  %p965_p5 = scmp.lt.u32.totalorder %s1378_s14, %s1534_s3 }
  0xa7   : > { %p966_p13 = scmp.lt.u32.totalorder %s964_s25, %s960_s21  ;;  %p968_p0 = scmp.lt.u32.totalorder %s960_s21, %s1378_s14 }
  0xa8   : > { %p962_p6 = pnand %p961_p1, %p1550_p3 }
  0xa9   : > { %p967_p8 = por %p966_p13, %p965_p5 }
  0xaa   : > { %p963_p2 = pneg %p962_p6 }
  0xab   : > { %p969_p11 = por %p968_p0, %p967_p8 }
  0xad   : > { %p970_p4 = pnand %p969_p11, %p963_p2 }
  0xaf   : > { %973 = shalt.err (!%p970_p4)
}
  0xb0   : > { %s1100_s6 = smov 16   ;;  %s1101_s27 = smov 1  }
  0xb1   : > { %799 = dma.vmem_to_hbm [thread:$0]  (%p1550_p3), %s1380_s5, 64, %s1378_s14, %s1409_s9, %s1100_s6, %s1100_s6, %s1101_s27  }
  0xb2   : > { %s974_s7 = scalar_lea.vmem %s1392_s18, 64  ;;  %s1102_s21 = smov [#allocation10]  }
  0xb3   : > { %p975_p7 = scmp.ne.s32.totalorder %s1392_s18, %s974_s7  ;;  %s978_s11 = sshll.u32 %s1102_s21, 4  ;;  %s979_s11 = int_to_ptr.vmem [resolvable:$false] %s978_s11 }
  0xb4   : > { %s980_s26 = scalar_lea.vmem %s979_s11, 128  ;;  %p981_p9 = scmp.lt.s32.totalorder %s1392_s18, %s979_s11 }
  0xb5   : > { %p976_p10 = pnand %p975_p7, %p1550_p3  ;;  %p982_p1 = scmp.lt.s32.totalorder %s980_s26, %s974_s7 }
  0xb7   : > { %p977_p12 = pneg %p976_p10  ;;  %p983_p6 = por %p982_p1, %p981_p9 }
  0xb9   : > { %p984_p2 = pnand %p983_p6, %p977_p12 }
  0xbb   : > { %987 = shalt.err (!%p984_p2)
}
  0xbc   : > { %s988_s5 = scalar_lea.hbm %s1390_s13, 64  ;;  %s992_s0 = scalar_lea.hbm %s1535_s4, 128 }
  0xbd   : > { %p989_p5 = scmp.ne.s32.totalorder %s1390_s13, %s988_s5  ;;  %p993_p0 = scmp.lt.u32.totalorder %s1390_s13, %s1535_s4 }
  0xbe   : > { %p994_p11 = scmp.lt.u32.totalorder %s992_s0, %s988_s5  ;;  %p996_p7 = scmp.lt.u32.totalorder %s988_s5, %s1390_s13 }
  0xbf   : > { %p990_p13 = pnand %p989_p5, %p1550_p3 }
  0xc0   : > { %p995_p4 = por %p994_p11, %p993_p0 }
  0xc1   : > { %p991_p8 = pneg %p990_p13 }
  0xc2   : > { %p997_p10 = por %p996_p7, %p995_p4 }
  0xc4   : > { %p998_p12 = pnand %p997_p10, %p991_p8 }
  0xc6   : > { %1001 = shalt.err (!%p998_p12)
}
  0xc7   : > { %800 = dma.vmem_to_hbm [thread:$0]  (%p1550_p3), %s1392_s18, 64, %s1390_s13, %s1409_s9, %s1100_s6, %s1100_s6, %s1101_s27   ;;  %v380_v14 = vadd.f32 %v1384_v2, %v363_v10  ;;  %v415_v15 = vadd.f32 %v1399_v7, %v397_v11  ;;  %v452_v16 = vadd.f32 %v1402_v8, %v434_v12  ;;  %v489_v17 = vadd.f32 %v1405_v9, %v471_v13 }
  0xc8   : > { %s1469_s26 = scalar_lea.hbm %s1533_s2, %s1366_s22  ;;  %s500_s18 = scalar_lea.sflag [#allocation4], %s1283_s12 }
  0xc9   : > { %381 = vst [vmem:[%s1306_s8] sm:$0x1] %v380_v14  ;;  %762 = vst [vmem:[%s1306_s8 + $0x1] sm:$0x1] %v415_v15  ;;  %s1002_s13 = scalar_lea.vmem %s1473_s24, 64  ;;  %s1103_s9 = smov [#allocation7]  }
  0xca   : > { %768 = vst [vmem:[%s1306_s8 + $0x2] sm:$0x1] %v452_v16  ;;  %774 = vst [vmem:[%s1306_s8 + $0x3] sm:$0x1] %v489_v17  ;;  %p1003_p9 = scmp.ne.s32.totalorder %s1473_s24, %s1002_s13  ;;  %s1006_s5 = sshll.u32 %s1103_s9, 4  ;;  %s1007_s5 = int_to_ptr.vmem [resolvable:$false] %s1006_s5 }
  0xcb   : > { %s1008_s22 = scalar_lea.vmem %s1007_s5, 128  ;;  %p1009_p2 = scmp.lt.s32.totalorder %s1473_s24, %s1007_s5 }
  0xcc   : > { %p1004_p1 = pnand %p1003_p9, %p1550_p3  ;;  %p1010_p5 = scmp.lt.s32.totalorder %s1008_s22, %s1002_s13 }
  0xce   : > { %p1005_p6 = pneg %p1004_p1  ;;  %p1011_p13 = por %p1010_p5, %p1009_p2 }
  0xd0   : > { %p1012_p8 = pnand %p1011_p13, %p1005_p6 }
  0xd2   : > { %1015 = shalt.err (!%p1012_p8)
}
  0xd3   : > { %s1016_s8 = scalar_lea.hbm %s1469_s26, 64  ;;  %s1020_s0 = scalar_lea.hbm %s1533_s2, 128 }
  0xd4   : > { %p1017_p0 = scmp.ne.s32.totalorder %s1469_s26, %s1016_s8  ;;  %p1021_p7 = scmp.lt.u32.totalorder %s1469_s26, %s1533_s2 }
  0xd5   : > { %p1022_p10 = scmp.lt.u32.totalorder %s1020_s0, %s1016_s8  ;;  %p1024_p9 = scmp.lt.u32.totalorder %s1016_s8, %s1469_s26 }
  0xd6   : > { %p1018_p11 = pnand %p1017_p0, %p1550_p3 }
  0xd7   : > { %p1023_p12 = por %p1022_p10, %p1021_p7 }
  0xd8   : > { %p1019_p4 = pneg %p1018_p11 }
  0xd9   : > { %p1025_p1 = por %p1024_p9, %p1023_p12 }
  0xdb   : > { %p1026_p6 = pnand %p1025_p1, %p1019_p4 }
  0xdd   : > { %1029 = shalt.err (!%p1026_p6)
}
  0xde   : > { %798 = dma.vmem_to_hbm [thread:$0]  (%p1550_p3), %s1473_s24, 64, %s1469_s26, %s500_s18, %s1100_s6, %s1100_s6, %s1101_s27  }
  0xdf PF: > { %s576_s7 = sand.u32 1, %s1072_s15   ;;  %p1551_p2 = scmp.ne.s32.totalorder %s1543_s30, 0 }
  0xe0   : > { %p1552_p5 = scmp.ge.s32.totalorder %s1092_s20, 2  ;;  %s577_s11 = scalar_lea.sflag [#allocation4], %s576_s7 }
  0xe2   : > { %p812_p13 = pnand %p1552_p5, %p1551_p2 }
  0xe4   : > { %1063 = dma.done.wait (!%p812_p13), %s577_s11, 64  }
  0xe5   : > { %1065 = vsyncadd (!%p812_p13), %s577_s11, 4294967232  ;;  %s1553_s28 = sadd.s32 4294967294, %s1092_s20  }
  0xe6   : > { %s585_s13 = sand.u32 1, %s1553_s28  }
  0xe7   : > { %s586_s9 = scalar_lea.sflag [#allocation9], %s585_s13 }
  0xe8   : > { %1067 = dma.done.wait (!%p812_p13), %s586_s9, 128  }
  0xe9   : > { %1069 = vsyncadd (!%p812_p13), %s586_s9, 4294967168  ;;  %s27_s20 = sadd.s32 1, %s1092_s20   ;;  %s1554_s15 = smov %s1076_s16 }
  0xea   : > { %p24_p3 = scmp.ge.s32.totalorder %s27_s20, 4   ;;  %s1555_s16 = smov %s1080_s17 }
  0xeb   : > { %s1556_s17 = smov %s1191_s29  ;;  %s1557_s18 = smov %s1088_s19 }
  0xec   : > { %s1558_s19 = smov %s1560_s23  ;;  %26 = sbr.rel (!%p24_p3) target bundleno = 12 (0xc), region = 134 }
  0xf3   :  { %600 = vsyncpa [#allocation3], 1 }
  0xf4   :  { %602 = vsyncpa [#allocation3 + $0x1], 1 }
  0xf5   :  { %603 = vsyncpa [#allocation6], 1 }
  0xf6   :  { %605 = vsyncpa [#allocation6 + $0x1], 1 }
  0xf7   :  { %606 = vsyncpa [#allocation4], 1 }
  0xf8   :  { %608 = vsyncpa [#allocation4 + $0x1], 1 }
  0xf9   :  { %609 = vsyncpa [#allocation9], 1 }
  0xfa   :  { %611 = vsyncpa [#allocation9 + $0x1], 1 }

</bundles_post_ra>
